<compile_context>
chip_gen: v7x
topology: tpu7x:2x2x1
jax: 0.10.0
libtpu: 0.0.40
codegen_flags: <defaults>
</compile_context>

<pallas_src>
import numpy as np
import jax
import jax.numpy as jnp
from jax.experimental import pallas as pl
from jax.experimental.pallas import tpu as pltpu


# ----------------------------- Pallas kernel -----------------------------------
def _decomp_att_kernel(w_ref, b_ref, x_ref, map_ref, att_ref):
    """Fused 1x1 conv (+bias) and channel softmax for one (batch, HW) tile.

    w_ref:   SMEM [Cout, Cin]   (Conv2d 1x1 weight, trailing 1x1 dims squeezed)
    b_ref:   SMEM [Cout]
    x_ref:   VMEM [BB, Cin, T]
    map_ref: VMEM [BB, Cout, T]   decomp_map = conv_fh(xf)
    att_ref: VMEM [BB, Cout, T]   decomp_att = softmax(decomp_map, channel axis)
    """
    cout, cin = w_ref.shape
    x = x_ref[...]                               # [BB, Cin, T]
    # Hoist per-input-channel slabs once; reused for every output channel.
    xs = [x[:, c, :] for c in range(cin)]        # each [BB, T]

    # 1x1 conv == per-pixel channel mix. Done as Cout*Cin scalar * vreg FMAs on
    # the VPU (scalar broadcast from SMEM) instead of a degenerate 3x10 MXU push.
    ys = []
    for o in range(cout):
        acc = w_ref[o, 0] * xs[0]
        for c in range(1, cin):
            acc = acc + w_ref[o, c] * xs[c]
        ys.append(acc + b_ref[o])                # [BB, T]

    # Numerically-stable softmax over the channel axis, exact division.
    m = ys[0]
    for o in range(1, cout):
        m = jnp.maximum(m, ys[o])
    es = [jnp.exp(y - m) for y in ys]
    denom = es[0]
    for o in range(1, cout):
        denom = denom + es[o]
    inv = 1.0 / denom

    for o in range(cout):
        map_ref[:, o, :] = ys[o].astype(map_ref.dtype)
        att_ref[:, o, :] = (es[o] * inv).astype(att_ref.dtype)


# ----------------------------- block-size heuristic -----------------------------
def _round_up(x, m):
    return ((x + m - 1) // m) * m


def _choose_blocks(n, cin, cout, hw, vmem_budget_bytes=10 * 1024 * 1024):
    """Pick (batch_block, hw_tile).

    * batch_block: largest divisor of n that is <= 8 (amortizes per-step cost;
      for the shipped N=2 case, all batches go in one step).
    * hw_tile: multiple of 128 dividing hw, bounded by a double-buffered VMEM
      budget that fits every chip's default scoped VMEM; prefers leaving >= 2
      HW tiles so the v7x megacore has a parallel axis to shard.
    """
    bb = max(d for d in range(1, min(n, 8) + 1) if n % d == 0)
    cin_p, cout_p = _round_up(cin, 8), _round_up(cout, 8)
    # double-buffered input + two double-buffered outputs, f32, padded sublanes
    bytes_per_lane = 2 * bb * (cin_p + 2 * cout_p) * 4
    max_lanes = max(128, (vmem_budget_bytes // bytes_per_lane) // 128 * 128)
    cands = [t for t in range(128, hw + 1, 128) if hw % t == 0 and t <= max_lanes]
    if not cands:
        return bb, hw                 # full-extent block (always layout-legal)
    multi = [t for t in cands if hw // t >= 2]
    return bb, (max(multi) if multi else max(cands))


# ----------------------------- forward wrapper ----------------------------------
def decomp_att_forward(xf, w, b, xh_list=None):
    """JAX/Pallas equivalent of Decomp_att.forward (dense outputs).

    xf: [N, Cin, H, W] float32 feature map
    w:  [Cout, Cin]    (Conv2d 1x1 weight with trailing 1x1 dims squeezed)
    b:  [Cout]
    xh_list: unused by the PyTorch forward; kept for signature fidelity.

    Returns (decomp_att, decomp_map), both [N, Cout, H, W]. The per-channel
    split (torch.split(att, 1, dim=1)) is pure slicing and should be done by
    the caller OUTSIDE jit to avoid materializing extra copies.
    """
    del xh_list
    n, cin, h, ww = xf.shape
    cout = w.shape[0]
    hw = h * ww

    bb, t = _choose_blocks(n, cin, cout, hw)
    grid = (n // bb, hw // t)

    x3 = xf.reshape(n, cin, hw)       # metadata-only reshape, NCHW-native

    dmap, att = pl.pallas_call(
        _decomp_att_kernel,
        out_shape=(jax.ShapeDtypeStruct((n, cout, hw), jnp.float32),
                   jax.ShapeDtypeStruct((n, cout, hw), jnp.float32)),
        grid_spec=pltpu.PrefetchScalarGridSpec(
            num_scalar_prefetch=0,
            grid=grid,
            in_specs=[
                pl.BlockSpec(memory_space=pltpu.MemorySpace.SMEM),          # w
                pl.BlockSpec(memory_space=pltpu.MemorySpace.SMEM),          # b
                pl.BlockSpec((bb, cin, t), lambda bi, hi: (bi, 0, hi)),     # x
            ],
            out_specs=[
                pl.BlockSpec((bb, cout, t), lambda bi, hi: (bi, 0, hi)),    # map
                pl.BlockSpec((bb, cout, t), lambda bi, hi: (bi, 0, hi)),    # att
            ]),
        compiler_params=pltpu.CompilerParams(
            dimension_semantics=("parallel", "parallel")),
    )(w, b, x3)

    return att.reshape(n, cout, h, ww), dmap.reshape(n, cout, h, ww)


# ----------------------------- pure-JAX reference -------------------------------
def _ref_forward(xf, w, b):
    y = jnp.einsum('oc,nchw->nohw', w, xf) + b[None, :, None, None]
    att = jax.nn.softmax(y, axis=1)
    return att, y


# ----------------------------- main ---------------------------------------------
if __name__ == "__main__":
    # Module defaults: hidden_dim=10, parts=2 -> Cout = parts + 1 = 3.
    N, HIDDEN_DIM, PARTS = 2, 10, 2
    H, W = 16, 16                     # HW = 256 -> two 128-lane tiles, one batch step
    COUT = PARTS + 1

    key = jax.random.PRNGKey(0)
    k_x, k_w, k_b = jax.random.split(key, 3)
    xf = jax.random.normal(k_x, (N, HIDDEN_DIM, H, W), jnp.float32)
    w = 0.1 * jax.random.normal(k_w, (COUT, HIDDEN_DIM), jnp.float32)
    b = 0.05 * jax.random.normal(k_b, (COUT,), jnp.float32)

    fwd = jax.jit(decomp_att_forward)
    att, dmap = fwd(xf, w, b)
    jax.block_until_ready((att, dmap))

    # torch.split(decomp_att, 1, dim=1) equivalent: zero-cost slicing OUTSIDE jit.
    decomp_att_list = [att[:, i:i + 1] for i in range(COUT)]

    # Correctness vs. pure-JAX reference (exact softmax division -> tight tol).
    ref_att, ref_map = _ref_forward(xf, w, b)
    np.testing.assert_allclose(np.asarray(dmap), np.asarray(ref_map),
                               rtol=1e-4, atol=1e-5)
    np.testing.assert_allclose(np.asarray(att), np.asarray(ref_att),
                               rtol=1e-4, atol=1e-5)
    assert len(decomp_att_list) == COUT
    assert decomp_att_list[0].shape == (N, 1, H, W)

    print("KERNEL_OK")
</pallas_src>

<mosaic_0001>
module attributes {stable_mosaic.version = 11 : i64} {
  func.func @_decomp_att_kernel(%arg0: i32, %arg1: i32, %arg2: memref<3x10xf32, #tpu.memory_space<smem>>, %arg3: memref<3xf32, #tpu.memory_space<smem>>, %arg4: memref<2x10x128xf32, #tpu.memory_space<vmem>>, %arg5: memref<2x3x128xf32, #tpu.memory_space<vmem>>, %arg6: memref<2x3x128xf32, #tpu.memory_space<vmem>>) attributes {dimension_semantics = [#tpu.dimension_semantics<parallel>, #tpu.dimension_semantics<parallel>], iteration_bounds = array<i64: 1, 2>, scalar_prefetch = 0 : i64, scratch_operands = 0 : i64, tpu.core_type = #tpu.core_type<tc>, window_params = [{transform_indices = @transform_0, window_bounds = array<i64: 3, 10>}, {transform_indices = @transform_1, window_bounds = array<i64: 3>}, {transform_indices = @transform_2, window_bounds = array<i64: 2, 10, 128>}, {transform_indices = @transform_3, window_bounds = array<i64: 2, 3, 128>}, {transform_indices = @transform_4, window_bounds = array<i64: 2, 3, 128>}]} {
    %c0 = arith.constant 0 : index
    %c0_0 = arith.constant 0 : index
    %c0_1 = arith.constant 0 : index
    %0 = vector.load %arg4[%c0, %c0_0, %c0_1] : memref<2x10x128xf32, #tpu.memory_space<vmem>>, vector<2x10x128xf32>
    %1 = vector.extract_strided_slice %0 {offsets = [0, 0, 0], sizes = [2, 1, 128], strides = [1, 1, 1]} : vector<2x10x128xf32> to vector<2x1x128xf32>
    %2 = vector.shape_cast %1 : vector<2x1x128xf32> to vector<2x128xf32>
    %3 = vector.extract_strided_slice %0 {offsets = [0, 1, 0], sizes = [2, 1, 128], strides = [1, 1, 1]} : vector<2x10x128xf32> to vector<2x1x128xf32>
    %4 = vector.shape_cast %3 : vector<2x1x128xf32> to vector<2x128xf32>
    %5 = vector.extract_strided_slice %0 {offsets = [0, 2, 0], sizes = [2, 1, 128], strides = [1, 1, 1]} : vector<2x10x128xf32> to vector<2x1x128xf32>
    %6 = vector.shape_cast %5 : vector<2x1x128xf32> to vector<2x128xf32>
    %7 = vector.extract_strided_slice %0 {offsets = [0, 3, 0], sizes = [2, 1, 128], strides = [1, 1, 1]} : vector<2x10x128xf32> to vector<2x1x128xf32>
    %8 = vector.shape_cast %7 : vector<2x1x128xf32> to vector<2x128xf32>
    %9 = vector.extract_strided_slice %0 {offsets = [0, 4, 0], sizes = [2, 1, 128], strides = [1, 1, 1]} : vector<2x10x128xf32> to vector<2x1x128xf32>
    %10 = vector.shape_cast %9 : vector<2x1x128xf32> to vector<2x128xf32>
    %11 = vector.extract_strided_slice %0 {offsets = [0, 5, 0], sizes = [2, 1, 128], strides = [1, 1, 1]} : vector<2x10x128xf32> to vector<2x1x128xf32>
    %12 = vector.shape_cast %11 : vector<2x1x128xf32> to vector<2x128xf32>
    %13 = vector.extract_strided_slice %0 {offsets = [0, 6, 0], sizes = [2, 1, 128], strides = [1, 1, 1]} : vector<2x10x128xf32> to vector<2x1x128xf32>
    %14 = vector.shape_cast %13 : vector<2x1x128xf32> to vector<2x128xf32>
    %15 = vector.extract_strided_slice %0 {offsets = [0, 7, 0], sizes = [2, 1, 128], strides = [1, 1, 1]} : vector<2x10x128xf32> to vector<2x1x128xf32>
    %16 = vector.shape_cast %15 : vector<2x1x128xf32> to vector<2x128xf32>
    %17 = vector.extract_strided_slice %0 {offsets = [0, 8, 0], sizes = [2, 1, 128], strides = [1, 1, 1]} : vector<2x10x128xf32> to vector<2x1x128xf32>
    %18 = vector.shape_cast %17 : vector<2x1x128xf32> to vector<2x128xf32>
    %19 = vector.extract_strided_slice %0 {offsets = [0, 9, 0], sizes = [2, 1, 128], strides = [1, 1, 1]} : vector<2x10x128xf32> to vector<2x1x128xf32>
    %20 = vector.shape_cast %19 : vector<2x1x128xf32> to vector<2x128xf32>
    %c0_2 = arith.constant 0 : index
    %c0_3 = arith.constant 0 : index
    %21 = memref.load %arg2[%c0_2, %c0_3] : memref<3x10xf32, #tpu.memory_space<smem>>
    %22 = vector.broadcast %21 : f32 to vector<2x128xf32>
    %23 = arith.mulf %22, %2 : vector<2x128xf32>
    %c0_4 = arith.constant 0 : index
    %c1 = arith.constant 1 : index
    %24 = memref.load %arg2[%c0_4, %c1] : memref<3x10xf32, #tpu.memory_space<smem>>
    %25 = vector.broadcast %24 : f32 to vector<2x128xf32>
    %26 = arith.mulf %25, %4 : vector<2x128xf32>
    %27 = arith.addf %23, %26 : vector<2x128xf32>
    %c0_5 = arith.constant 0 : index
    %c2 = arith.constant 2 : index
    %28 = memref.load %arg2[%c0_5, %c2] : memref<3x10xf32, #tpu.memory_space<smem>>
    %29 = vector.broadcast %28 : f32 to vector<2x128xf32>
    %30 = arith.mulf %29, %6 : vector<2x128xf32>
    %31 = arith.addf %27, %30 : vector<2x128xf32>
    %c0_6 = arith.constant 0 : index
    %c3 = arith.constant 3 : index
    %32 = memref.load %arg2[%c0_6, %c3] : memref<3x10xf32, #tpu.memory_space<smem>>
    %33 = vector.broadcast %32 : f32 to vector<2x128xf32>
    %34 = arith.mulf %33, %8 : vector<2x128xf32>
    %35 = arith.addf %31, %34 : vector<2x128xf32>
    %c0_7 = arith.constant 0 : index
    %c4 = arith.constant 4 : index
    %36 = memref.load %arg2[%c0_7, %c4] : memref<3x10xf32, #tpu.memory_space<smem>>
    %37 = vector.broadcast %36 : f32 to vector<2x128xf32>
    %38 = arith.mulf %37, %10 : vector<2x128xf32>
    %39 = arith.addf %35, %38 : vector<2x128xf32>
    %c0_8 = arith.constant 0 : index
    %c5 = arith.constant 5 : index
    %40 = memref.load %arg2[%c0_8, %c5] : memref<3x10xf32, #tpu.memory_space<smem>>
    %41 = vector.broadcast %40 : f32 to vector<2x128xf32>
    %42 = arith.mulf %41, %12 : vector<2x128xf32>
    %43 = arith.addf %39, %42 : vector<2x128xf32>
    %c0_9 = arith.constant 0 : index
    %c6 = arith.constant 6 : index
    %44 = memref.load %arg2[%c0_9, %c6] : memref<3x10xf32, #tpu.memory_space<smem>>
    %45 = vector.broadcast %44 : f32 to vector<2x128xf32>
    %46 = arith.mulf %45, %14 : vector<2x128xf32>
    %47 = arith.addf %43, %46 : vector<2x128xf32>
    %c0_10 = arith.constant 0 : index
    %c7 = arith.constant 7 : index
    %48 = memref.load %arg2[%c0_10, %c7] : memref<3x10xf32, #tpu.memory_space<smem>>
    %49 = vector.broadcast %48 : f32 to vector<2x128xf32>
    %50 = arith.mulf %49, %16 : vector<2x128xf32>
    %51 = arith.addf %47, %50 : vector<2x128xf32>
    %c0_11 = arith.constant 0 : index
    %c8 = arith.constant 8 : index
    %52 = memref.load %arg2[%c0_11, %c8] : memref<3x10xf32, #tpu.memory_space<smem>>
    %53 = vector.broadcast %52 : f32 to vector<2x128xf32>
    %54 = arith.mulf %53, %18 : vector<2x128xf32>
    %55 = arith.addf %51, %54 : vector<2x128xf32>
    %c0_12 = arith.constant 0 : index
    %c9 = arith.constant 9 : index
    %56 = memref.load %arg2[%c0_12, %c9] : memref<3x10xf32, #tpu.memory_space<smem>>
    %57 = vector.broadcast %56 : f32 to vector<2x128xf32>
    %58 = arith.mulf %57, %20 : vector<2x128xf32>
    %59 = arith.addf %55, %58 : vector<2x128xf32>
    %c0_13 = arith.constant 0 : index
    %60 = memref.load %arg3[%c0_13] : memref<3xf32, #tpu.memory_space<smem>>
    %61 = vector.broadcast %60 : f32 to vector<2x128xf32>
    %62 = arith.addf %59, %61 : vector<2x128xf32>
    %c1_14 = arith.constant 1 : index
    %c0_15 = arith.constant 0 : index
    %63 = memref.load %arg2[%c1_14, %c0_15] : memref<3x10xf32, #tpu.memory_space<smem>>
    %64 = vector.broadcast %63 : f32 to vector<2x128xf32>
    %65 = arith.mulf %64, %2 : vector<2x128xf32>
    %c1_16 = arith.constant 1 : index
    %c1_17 = arith.constant 1 : index
    %66 = memref.load %arg2[%c1_16, %c1_17] : memref<3x10xf32, #tpu.memory_space<smem>>
    %67 = vector.broadcast %66 : f32 to vector<2x128xf32>
    %68 = arith.mulf %67, %4 : vector<2x128xf32>
    %69 = arith.addf %65, %68 : vector<2x128xf32>
    %c1_18 = arith.constant 1 : index
    %c2_19 = arith.constant 2 : index
    %70 = memref.load %arg2[%c1_18, %c2_19] : memref<3x10xf32, #tpu.memory_space<smem>>
    %71 = vector.broadcast %70 : f32 to vector<2x128xf32>
    %72 = arith.mulf %71, %6 : vector<2x128xf32>
    %73 = arith.addf %69, %72 : vector<2x128xf32>
    %c1_20 = arith.constant 1 : index
    %c3_21 = arith.constant 3 : index
    %74 = memref.load %arg2[%c1_20, %c3_21] : memref<3x10xf32, #tpu.memory_space<smem>>
    %75 = vector.broadcast %74 : f32 to vector<2x128xf32>
    %76 = arith.mulf %75, %8 : vector<2x128xf32>
    %77 = arith.addf %73, %76 : vector<2x128xf32>
    %c1_22 = arith.constant 1 : index
    %c4_23 = arith.constant 4 : index
    %78 = memref.load %arg2[%c1_22, %c4_23] : memref<3x10xf32, #tpu.memory_space<smem>>
    %79 = vector.broadcast %78 : f32 to vector<2x128xf32>
    %80 = arith.mulf %79, %10 : vector<2x128xf32>
    %81 = arith.addf %77, %80 : vector<2x128xf32>
    %c1_24 = arith.constant 1 : index
    %c5_25 = arith.constant 5 : index
    %82 = memref.load %arg2[%c1_24, %c5_25] : memref<3x10xf32, #tpu.memory_space<smem>>
    %83 = vector.broadcast %82 : f32 to vector<2x128xf32>
    %84 = arith.mulf %83, %12 : vector<2x128xf32>
    %85 = arith.addf %81, %84 : vector<2x128xf32>
    %c1_26 = arith.constant 1 : index
    %c6_27 = arith.constant 6 : index
    %86 = memref.load %arg2[%c1_26, %c6_27] : memref<3x10xf32, #tpu.memory_space<smem>>
    %87 = vector.broadcast %86 : f32 to vector<2x128xf32>
    %88 = arith.mulf %87, %14 : vector<2x128xf32>
    %89 = arith.addf %85, %88 : vector<2x128xf32>
    %c1_28 = arith.constant 1 : index
    %c7_29 = arith.constant 7 : index
    %90 = memref.load %arg2[%c1_28, %c7_29] : memref<3x10xf32, #tpu.memory_space<smem>>
    %91 = vector.broadcast %90 : f32 to vector<2x128xf32>
    %92 = arith.mulf %91, %16 : vector<2x128xf32>
    %93 = arith.addf %89, %92 : vector<2x128xf32>
    %c1_30 = arith.constant 1 : index
    %c8_31 = arith.constant 8 : index
    %94 = memref.load %arg2[%c1_30, %c8_31] : memref<3x10xf32, #tpu.memory_space<smem>>
    %95 = vector.broadcast %94 : f32 to vector<2x128xf32>
    %96 = arith.mulf %95, %18 : vector<2x128xf32>
    %97 = arith.addf %93, %96 : vector<2x128xf32>
    %c1_32 = arith.constant 1 : index
    %c9_33 = arith.constant 9 : index
    %98 = memref.load %arg2[%c1_32, %c9_33] : memref<3x10xf32, #tpu.memory_space<smem>>
    %99 = vector.broadcast %98 : f32 to vector<2x128xf32>
    %100 = arith.mulf %99, %20 : vector<2x128xf32>
    %101 = arith.addf %97, %100 : vector<2x128xf32>
    %c1_34 = arith.constant 1 : index
    %102 = memref.load %arg3[%c1_34] : memref<3xf32, #tpu.memory_space<smem>>
    %103 = vector.broadcast %102 : f32 to vector<2x128xf32>
    %104 = arith.addf %101, %103 : vector<2x128xf32>
    %c2_35 = arith.constant 2 : index
    %c0_36 = arith.constant 0 : index
    %105 = memref.load %arg2[%c2_35, %c0_36] : memref<3x10xf32, #tpu.memory_space<smem>>
    %106 = vector.broadcast %105 : f32 to vector<2x128xf32>
    %107 = arith.mulf %106, %2 : vector<2x128xf32>
    %c2_37 = arith.constant 2 : index
    %c1_38 = arith.constant 1 : index
    %108 = memref.load %arg2[%c2_37, %c1_38] : memref<3x10xf32, #tpu.memory_space<smem>>
    %109 = vector.broadcast %108 : f32 to vector<2x128xf32>
    %110 = arith.mulf %109, %4 : vector<2x128xf32>
    %111 = arith.addf %107, %110 : vector<2x128xf32>
    %c2_39 = arith.constant 2 : index
    %c2_40 = arith.constant 2 : index
    %112 = memref.load %arg2[%c2_39, %c2_40] : memref<3x10xf32, #tpu.memory_space<smem>>
    %113 = vector.broadcast %112 : f32 to vector<2x128xf32>
    %114 = arith.mulf %113, %6 : vector<2x128xf32>
    %115 = arith.addf %111, %114 : vector<2x128xf32>
    %c2_41 = arith.constant 2 : index
    %c3_42 = arith.constant 3 : index
    %116 = memref.load %arg2[%c2_41, %c3_42] : memref<3x10xf32, #tpu.memory_space<smem>>
    %117 = vector.broadcast %116 : f32 to vector<2x128xf32>
    %118 = arith.mulf %117, %8 : vector<2x128xf32>
    %119 = arith.addf %115, %118 : vector<2x128xf32>
    %c2_43 = arith.constant 2 : index
    %c4_44 = arith.constant 4 : index
    %120 = memref.load %arg2[%c2_43, %c4_44] : memref<3x10xf32, #tpu.memory_space<smem>>
    %121 = vector.broadcast %120 : f32 to vector<2x128xf32>
    %122 = arith.mulf %121, %10 : vector<2x128xf32>
    %123 = arith.addf %119, %122 : vector<2x128xf32>
    %c2_45 = arith.constant 2 : index
    %c5_46 = arith.constant 5 : index
    %124 = memref.load %arg2[%c2_45, %c5_46] : memref<3x10xf32, #tpu.memory_space<smem>>
    %125 = vector.broadcast %124 : f32 to vector<2x128xf32>
    %126 = arith.mulf %125, %12 : vector<2x128xf32>
    %127 = arith.addf %123, %126 : vector<2x128xf32>
    %c2_47 = arith.constant 2 : index
    %c6_48 = arith.constant 6 : index
    %128 = memref.load %arg2[%c2_47, %c6_48] : memref<3x10xf32, #tpu.memory_space<smem>>
    %129 = vector.broadcast %128 : f32 to vector<2x128xf32>
    %130 = arith.mulf %129, %14 : vector<2x128xf32>
    %131 = arith.addf %127, %130 : vector<2x128xf32>
    %c2_49 = arith.constant 2 : index
    %c7_50 = arith.constant 7 : index
    %132 = memref.load %arg2[%c2_49, %c7_50] : memref<3x10xf32, #tpu.memory_space<smem>>
    %133 = vector.broadcast %132 : f32 to vector<2x128xf32>
    %134 = arith.mulf %133, %16 : vector<2x128xf32>
    %135 = arith.addf %131, %134 : vector<2x128xf32>
    %c2_51 = arith.constant 2 : index
    %c8_52 = arith.constant 8 : index
    %136 = memref.load %arg2[%c2_51, %c8_52] : memref<3x10xf32, #tpu.memory_space<smem>>
    %137 = vector.broadcast %136 : f32 to vector<2x128xf32>
    %138 = arith.mulf %137, %18 : vector<2x128xf32>
    %139 = arith.addf %135, %138 : vector<2x128xf32>
    %c2_53 = arith.constant 2 : index
    %c9_54 = arith.constant 9 : index
    %140 = memref.load %arg2[%c2_53, %c9_54] : memref<3x10xf32, #tpu.memory_space<smem>>
    %141 = vector.broadcast %140 : f32 to vector<2x128xf32>
    %142 = arith.mulf %141, %20 : vector<2x128xf32>
    %143 = arith.addf %139, %142 : vector<2x128xf32>
    %c2_55 = arith.constant 2 : index
    %144 = memref.load %arg3[%c2_55] : memref<3xf32, #tpu.memory_space<smem>>
    %145 = vector.broadcast %144 : f32 to vector<2x128xf32>
    %146 = arith.addf %143, %145 : vector<2x128xf32>
    %147 = arith.maximumf %62, %104 : vector<2x128xf32>
    %148 = arith.maximumf %147, %146 : vector<2x128xf32>
    %149 = arith.subf %62, %148 : vector<2x128xf32>
    %150 = math.exp %149 : vector<2x128xf32>
    %151 = arith.subf %104, %148 : vector<2x128xf32>
    %152 = math.exp %151 : vector<2x128xf32>
    %153 = arith.subf %146, %148 : vector<2x128xf32>
    %154 = math.exp %153 : vector<2x128xf32>
    %155 = arith.addf %150, %152 : vector<2x128xf32>
    %156 = arith.addf %155, %154 : vector<2x128xf32>
    %cst = arith.constant 1.000000e+00 : f32
    %157 = vector.broadcast %cst : f32 to vector<2x128xf32>
    %158 = arith.divf %157, %156 : vector<2x128xf32>
    %c0_56 = arith.constant 0 : index
    %c0_57 = arith.constant 0 : index
    %c0_58 = arith.constant 0 : index
    %159 = vector.load %arg5[%c0_56, %c0_57, %c0_58] : memref<2x3x128xf32, #tpu.memory_space<vmem>>, vector<2x1x128xf32>
    %160 = vector.shape_cast %159 : vector<2x1x128xf32> to vector<2x128xf32>
    %161 = vector.shape_cast %62 : vector<2x128xf32> to vector<2x1x128xf32>
    tpu.vector_store %arg5[%c0_56, %c0_57, %c0_58], %161 {strides = array<i32>} : memref<2x3x128xf32, #tpu.memory_space<vmem>>, vector<2x1x128xf32>,
    %162 = arith.mulf %150, %158 : vector<2x128xf32>
    %c0_59 = arith.constant 0 : index
    %c0_60 = arith.constant 0 : index
    %c0_61 = arith.constant 0 : index
    %163 = vector.load %arg6[%c0_59, %c0_60, %c0_61] : memref<2x3x128xf32, #tpu.memory_space<vmem>>, vector<2x1x128xf32>
    %164 = vector.shape_cast %163 : vector<2x1x128xf32> to vector<2x128xf32>
    %165 = vector.shape_cast %162 : vector<2x128xf32> to vector<2x1x128xf32>
    tpu.vector_store %arg6[%c0_59, %c0_60, %c0_61], %165 {strides = array<i32>} : memref<2x3x128xf32, #tpu.memory_space<vmem>>, vector<2x1x128xf32>,
    %c0_62 = arith.constant 0 : index
    %c1_63 = arith.constant 1 : index
    %c0_64 = arith.constant 0 : index
    %166 = vector.load %arg5[%c0_62, %c1_63, %c0_64] : memref<2x3x128xf32, #tpu.memory_space<vmem>>, vector<2x1x128xf32>
    %167 = vector.shape_cast %166 : vector<2x1x128xf32> to vector<2x128xf32>
    %168 = vector.shape_cast %104 : vector<2x128xf32> to vector<2x1x128xf32>
    tpu.vector_store %arg5[%c0_62, %c1_63, %c0_64], %168 {strides = array<i32>} : memref<2x3x128xf32, #tpu.memory_space<vmem>>, vector<2x1x128xf32>,
    %169 = arith.mulf %152, %158 : vector<2x128xf32>
    %c0_65 = arith.constant 0 : index
    %c1_66 = arith.constant 1 : index
    %c0_67 = arith.constant 0 : index
    %170 = vector.load %arg6[%c0_65, %c1_66, %c0_67] : memref<2x3x128xf32, #tpu.memory_space<vmem>>, vector<2x1x128xf32>
    %171 = vector.shape_cast %170 : vector<2x1x128xf32> to vector<2x128xf32>
    %172 = vector.shape_cast %169 : vector<2x128xf32> to vector<2x1x128xf32>
    tpu.vector_store %arg6[%c0_65, %c1_66, %c0_67], %172 {strides = array<i32>} : memref<2x3x128xf32, #tpu.memory_space<vmem>>, vector<2x1x128xf32>,
    %c0_68 = arith.constant 0 : index
    %c2_69 = arith.constant 2 : index
    %c0_70 = arith.constant 0 : index
    %173 = vector.load %arg5[%c0_68, %c2_69, %c0_70] : memref<2x3x128xf32, #tpu.memory_space<vmem>>, vector<2x1x128xf32>
    %174 = vector.shape_cast %173 : vector<2x1x128xf32> to vector<2x128xf32>
    %175 = vector.shape_cast %146 : vector<2x128xf32> to vector<2x1x128xf32>
    tpu.vector_store %arg5[%c0_68, %c2_69, %c0_70], %175 {strides = array<i32>} : memref<2x3x128xf32, #tpu.memory_space<vmem>>, vector<2x1x128xf32>,
    %176 = arith.mulf %154, %158 : vector<2x128xf32>
    %c0_71 = arith.constant 0 : index
    %c2_72 = arith.constant 2 : index
    %c0_73 = arith.constant 0 : index
    %177 = vector.load %arg6[%c0_71, %c2_72, %c0_73] : memref<2x3x128xf32, #tpu.memory_space<vmem>>, vector<2x1x128xf32>
    %178 = vector.shape_cast %177 : vector<2x1x128xf32> to vector<2x128xf32>
    %179 = vector.shape_cast %176 : vector<2x128xf32> to vector<2x1x128xf32>
    tpu.vector_store %arg6[%c0_71, %c2_72, %c0_73], %179 {strides = array<i32>} : memref<2x3x128xf32, #tpu.memory_space<vmem>>, vector<2x1x128xf32>,
    return
  }
  func.func @transform_0(%arg0: i32, %arg1: i32) -> (i32, i32) {
    %c0_i32 = arith.constant 0 : i32
    %c0_i32_0 = arith.constant 0 : i32
    %c0_i32_1 = arith.constant 0 : i32
    return %c0_i32, %c0_i32_0 : i32, i32
  }
  func.func @transform_1(%arg0: i32, %arg1: i32) -> i32 {
    %c0_i32 = arith.constant 0 : i32
    %c0_i32_0 = arith.constant 0 : i32
    return %c0_i32 : i32
  }
  func.func @transform_2(%arg0: i32, %arg1: i32) -> (i32, i32, i32) {
    %c0_i32 = arith.constant 0 : i32
    %c0_i32_0 = arith.constant 0 : i32
    return %arg0, %c0_i32, %arg1 : i32, i32, i32
  }
  func.func @transform_3(%arg0: i32, %arg1: i32) -> (i32, i32, i32) {
    %c0_i32 = arith.constant 0 : i32
    %c0_i32_0 = arith.constant 0 : i32
    return %arg0, %c0_i32, %arg1 : i32, i32, i32
  }
  func.func @transform_4(%arg0: i32, %arg1: i32) -> (i32, i32, i32) {
    %c0_i32 = arith.constant 0 : i32
    %c0_i32_0 = arith.constant 0 : i32
    return %arg0, %c0_i32, %arg1 : i32, i32, i32
  }
}

</mosaic_0001>

<bundles_post_ra>
// kernel: decomp_att_forward.1
= control target key start
LH: loop header
LB: loop body
LE: loop exit
PB: predicated region body
PF: predicated region fallthrough
CT: control target
= control target key end

     0   :  { %s1596_s0 = inlined_call_operand.vmem [shape: f32[3,10], index: 0, kind: input, shape index: {}]   ;;  %s1597_s1 = inlined_call_operand.vmem [shape: f32[3], index: 1, kind: input, shape index: {}]   ;;  %s1598_s2 = inlined_call_operand.vmem [shape: f32[2,10,256], index: 2, kind: input, shape index: {}]   ;;  %s1599_s3 = inlined_call_operand.vmem [shape: f32[2,3,256], index: 3, kind: output, shape index: {0}]   ;;  %s1600_s4 = inlined_call_operand.vmem [shape: f32[2,3,256], index: 4, kind: output, shape index: {1}]  }
   0x1   :  { %1614 = sst [smem:[#allocation22_spill]] %s1596_s0 }
   0x2   :  { %1615 = sst [smem:[#allocation23_spill]] %s1597_s1 }
   0x3   :  { %1616 = sst [smem:[#allocation24_spill]] %s1598_s2 }
   0x4   :  { %1617 = sst [smem:[#allocation25_spill]] %s1599_s3 }
   0x5   :  { %1618 = sst [smem:[#allocation26_spill]] %s1600_s4 }
   0x6   :  { %10 = vsyncpa [#allocation3], 0 }
   0x7   :  { %11 = vsyncpa [#allocation5], 0  ;;  %s1142_s15 = smov 0   ;;  %s1144_s16 = smov 0  }
   0x8   :  { %s1146_s17 = smov 0   ;;  %s1148_s18 = smov 0  }
   0x9   :  { %s1150_s19 = smov 0  }
   0xa LB: > { %1619 = sst [smem:[#allocation11_spill]] %s1101_s16  ;;  %s909_s20 = sadd.s32 4294967295, %s1113_s19   ;;  %s1113_s19 = sphi %s1150_s19, %s17_s19   ;;  %s1109_s18 = sphi %s1148_s18, %s1658_s18   ;;  %s1105_s17 = sphi %s1146_s17, %s1657_s17   ;;  %s1101_s16 = sphi %s1144_s16, %s1656_s16   ;;  %s1097_s15 = sphi %s1142_s15, %s1655_s15  }
   0xb   : > { %1620 = sst [smem:[#allocation12_spill]] %s1105_s17  ;;  %s26_s21 = sadd.s32 1, %s1109_s18 }
   0xc   : > { %1621 = sst [smem:[#allocation13_spill]] %s1109_s18  ;;  %p27_p0 = scmp.ge.s32.totalorder %s26_s21, 2 }
   0xd   : > { %1622 = sst [smem:[#allocation14_spill]] %s1113_s19  ;;  %s80_s22 = sadd.s32 1, %s1101_s16 }
   0xe   : > { %p87_p1 = scmp.ne.s32.totalorder %s1101_s16, %s1097_s15  ;;  %p88_p2 = scmp.eq.s32.totalorder %s1113_s19, 0 }
   0xf   : > { %s1660_s21 = smov (%p27_p0, %s26_s21), 0  ;;  %p119_p4 = scmp.eq.s32.totalorder %s909_s20, 1 }
  0x10   : > { %1623 = sst [smem:[#allocation15_spill]] %s1660_s21  ;;  %p1175_p3 = por %p88_p2, %p87_p1 }
  0x11   : > { %s76_s24 = ssub.s32 %s1109_s18, %s1660_s21  ;;  %p911_p5 = scmp.ge.s32.totalorder %s1113_s19, 1 }
  0x12   : > { %s1624_s23 = scalar_select %p1175_p3, 1, 0 }
  0x13   : > { %p78_p6 = scmp.eq.s32.totalorder %s76_s24, 0  ;;  %p1182_p7 = por %p119_p4, %p87_p1 }
  0x14   : > { %p160_p8 = scmp.lt.s32.totalorder %s1113_s19, 3  ;;  %p1194_p10 = scmp.eq.s32.totalorder %s909_s20, 0 }
  0x15   : > { %s1625_s25 = scalar_select %p1182_p7, 1, 0 }
  0x16   : > { %s1188_s26 = scalar_select %p78_p6, %s1101_s16, %s80_s22  }
  0x17   : > { %1626 = sst [smem:[#allocation16_spill]] %s1625_s25  ;;  %p1190_p9 = pnand %p911_p5, %p160_p8 }
  0x18   : > { %1627 = sst [smem:[#allocation17_spill]] %s1188_s26  ;;  %s1630_s0 = sld [smem:[#allocation22_spill]] }
  0x19   : > { %s1628_s27 = scalar_select %p1190_p9, 1, 0 }
  0x1a   : > { %s1629_s28 = scalar_select %p1194_p10, 1, 0 }
  0x1b   : > { %p968_p11 = pneg %p1190_p9  ;;  %s1631_s1 = sld [smem:[#allocation23_spill]] }
  0x1d   : > { %p1208_p12 = pnand %p1194_p10, %p968_p11 }
  0x1e   : > { %s173_s5 = sshll.u32 %s1630_s0, 4  ;;  %s174_s5 = int_to_ptr.vmem [resolvable:$true] %s173_s5 }
  0x1f   : > { %s1037_s10 = scalar_lea.vmem %s174_s5, 64  ;;  %p1039_p0 = pneg %p1208_p12 }
  0x20   : > { %p1038_p13 = scmp.ne.s32.totalorder %s174_s5, %s1037_s10  ;;  %p1045_p4 = scmp.lt.s32.totalorder %s174_s5, %s174_s5 }
  0x21   : > { %s184_s8 = sshll.u32 %s1631_s1, 4  ;;  %p1046_p5 = scmp.lt.s32.totalorder %s1037_s10, %s1037_s10  ;;  %s185_s8 = int_to_ptr.vmem [resolvable:$true] %s184_s8 }
  0x22   : > { %p1040_p1 = pnand %p1039_p0, %p1038_p13 }
  0x23   : > { %p1047_p6 = por %p1046_p5, %p1045_p4 }
  0x24   : > { %p1041_p2 = pneg %p1040_p1 }
  0x26   : > { %p1048_p8 = pnand %p1047_p6, %p1041_p2 }
  0x28   : > { %1051 = shalt.err (!%p1048_p8)
}
  0x29   : > { %s1115_s11 = smov [#allocation2]   ;;  %s1052_s12 = scalar_lea.vmem %s185_s8, 16 }
  0x2a   : > { %971 = dma.vmem_to_smem (!%p1208_p12), %s174_s5, 64, %s1115_s11, [#allocation3]  }
  0x2b   : > { %p1053_p11 = scmp.ne.s32.totalorder %s185_s8, %s1052_s12  ;;  %p1060_p9 = scmp.lt.s32.totalorder %s185_s8, %s185_s8 }
  0x2c   : > { %p1061_p3 = scmp.lt.s32.totalorder %s1052_s12, %s1052_s12 }
  0x2d   : > { %p1055_p7 = pnand %p1053_p11, %p1039_p0 }
  0x2e   : > { %p1062_p13 = por %p1061_p3, %p1060_p9 }
  0x2f   : > { %p1056_p10 = pneg %p1055_p7 }
  0x31   : > { %p1063_p1 = pnand %p1062_p13, %p1056_p10 }
  0x33   : > { %1066 = shalt.err (!%p1063_p1)
}
  0x34   : > { %s1116_s13 = smov [#allocation4]   ;;  %p914_p2 = scmp.ge.s32.totalorder %s1113_s19, 2 }
  0x35   : > { %974 = dma.vmem_to_smem (!%p1208_p12), %s185_s8, 16, %s1116_s13, [#allocation5]  }
  0x36   : > { %191 = sbr.rel (%p914_p2) target bundleno = 73 (0x49), region = 24  ;;  %p1633_p4 = scmp.ne.s32.totalorder (!%p914_p2), %s1624_s23, 0 }
  0x3d   : > { %194 = sbr.rel (!%p1633_p4) target bundleno = 73 (0x49), region = 28  ;;  %s196_s14 = sand.u32 (%p1633_p4), 1, %s1101_s16  }
  0x3e   : > { %s916_s20 = sshll.u32 (%p1633_p4), %s1109_s18, 3  ;;  %s915_s22 = sshll.u32 (%p1633_p4), %s196_s14, 5 }
  0x3f   : > { %s1634_s2 = sld [smem:[#allocation24_spill]] (%p1633_p4)  ;;  %s198_s5 = scalar_lea.vmem (%p1633_p4), [#allocation6], %s915_s22 }
  0x45   : > { %s203_s30 = scalar_lea.vmem %s1634_s2, %s916_s20 }
  0x46   : > { %v237_v0 = vld [vmem:[%s203_s30] sm:$0xff]  ;;  %v239_v1 = vld [vmem:[%s203_s30 + $0x10] sm:$0xff] }
  0x47   : > { %v241_v2 = vld [vmem:[%s203_s30 + $0x20] sm:$0xff]  ;;  %238 = vst [vmem:[%s198_s5] sm:$0xff] %v237_v0  ;;  %240 = vst [vmem:[%s198_s5 + $0x8] sm:$0xff] %v239_v1  ;;  %v243_v3 = vld [vmem:[%s203_s30 + $0x30] sm:$0xff] }
  0x48   : > { %242 = vst [vmem:[%s198_s5 + $0x10] sm:$0xff] %v241_v2  ;;  %244 = vst [vmem:[%s198_s5 + $0x18] sm:$0xff] %v243_v3 }
  0x49 PF: > { %p1635_p3 = scmp.ne.s32.totalorder %s1628_s27, 0 }
  0x4b   : > { %253 = sbr.rel (%p1635_p3) target bundleno = 214 (0xd6), region = 66 }
  0x52   : > { %p1636_p7 = scmp.ne.s32.totalorder %s1629_s28, 0 }
  0x54   : > { %1088 = dma.done.wait (%p1636_p7), [#allocation3], 64  }
  0x55   : > { %1090 = vsyncadd (%p1636_p7), [#allocation3], 4294967232 }
  0x56   : > { %1092 = dma.done.wait (%p1636_p7), [#allocation5], 16  }
  0x57   : > { %1094 = vsyncadd (%p1636_p7), [#allocation5], 4294967280  ;;  %s1604_s23 = sand.u32 1, %s1097_s15  }
  0x58   : > { %s920_s6 = sshll.u32 %s1604_s23, 5 }
  0x59   : > { %s1239_s7 = scalar_lea.vmem [#allocation6], %s920_s6 }
  0x5a   : > { %270 = sfence }
  0x5b   : > { %s1241_s27 = sld [smem:[#allocation2]]  ;;  %s1243_s8 = sld [smem:[#allocation2 + $0x1]]  ;;  %v1258_v4 = vld [vmem:[%s1239_s7] sm:$0xff]  ;;  %v1295_v15 = vld [vmem:[%s1239_s7 + $0x10] sm:$0xff]  ;;  %v1316_v26 = vld [vmem:[%s1239_s7 + $0x8] sm:$0x3] }
  0x5c   : > { %s1245_s9 = sld [smem:[#allocation2 + $0x2]]  ;;  %s1247_s28 = sld [smem:[#allocation2 + $0x3]] }
  0x5d   : > { %s1249_s10 = sld [smem:[#allocation2 + $0x4]]  ;;  %s1251_s11 = sld [smem:[#allocation2 + $0x5]] }
  0x5e   : > { %s1253_s12 = sld [smem:[#allocation2 + $0x6]]  ;;  %s1255_s13 = sld [smem:[#allocation2 + $0x7]] }
  0x5f   : > { %s1260_s14 = sld [smem:[#allocation2 + $0x8]]  ;;  %s1262_s20 = sld [smem:[#allocation2 + $0x9]] }
  0x60   : > { %s1265_s22 = sld [smem:[#allocation4]]  ;;  %s1270_s29 = sld [smem:[#allocation2 + $0x81]] }
  0x61   : > { %v301_v5 = vstv %s1241_s27  ;;  %s1267_s24 = sld [smem:[#allocation2 + $0x80]]  ;;  %v305_v6 = vstv %s1243_s8  ;;  %s1272_s30 = sld [smem:[#allocation2 + $0x82]] }
  0x62   : > { %v302_v7 = vmul.f32 %v301_v5, %v1258_v4  ;;  %v306_v8 = vmul.f32 %v305_v6, %v1258_v4  ;;  %v317_v9 = vstv %s1245_s9  ;;  %v329_v10 = vstv %s1247_s28  ;;  %s1280_s5 = sld [smem:[#allocation2 + $0x83]]  ;;  %s1290_s6 = sld [smem:[#allocation2 + $0x84]] }
  0x63   : > { %v318_v11 = vmul.f32 %v317_v9, %v1258_v4  ;;  %v330_v12 = vmul.f32 %v329_v10, %v1258_v4  ;;  %v341_v13 = vstv %s1249_s10  ;;  %v353_v14 = vstv %s1251_s11  ;;  %s1292_s8 = sld [smem:[#allocation2 + $0x85]]  ;;  %s1308_s23 = sld [smem:[#allocation2 + $0x86]] }
  0x64   : > { %v310_v16 = vrot.slane %v306_v8, 1  ;;  %v342_v17 = vmul.f32 %v341_v13, %v1258_v4  ;;  %v354_v18 = vmul.f32 %v353_v14, %v1258_v4  ;;  %v365_v19 = vstv %s1253_s12  ;;  %s1310_s0 = sld [smem:[#allocation2 + $0x87]]  ;;  %s1322_s1 = sld [smem:[#allocation2 + $0x89]] }
  0x65   : > { %1637 = sst [smem:[#allocation18_spill]] %s1260_s14  ;;  %v322_v20 = vrot.slane %v318_v11, 2  ;;  %v366_v21 = vmul.f32 %v365_v19, %v1258_v4  ;;  %v377_v22 = vstv %s1255_s13  ;;  %v334_v24 = vrot.slane %v330_v12, 3  ;;  %s1330_s2 = sld [smem:[#allocation2 + $0x88]] }
  0x66   : > { %v314_v23 = vadd.f32 %v310_v16, %v302_v7  ;;  %v1313_v25 = vmul.f32 %v305_v6, %v1295_v15  ;;  %v346_v27 = vrot.slane %v342_v17, 4  ;;  %v358_v28 = vrot.slane %v354_v18, 5  ;;  %s1332_s21 = sld [smem:[#allocation2 + $0x100]]  ;;  %s1343_s18 = sld [smem:[#allocation2 + $0x101]] }
  0x67   : > { %v378_v29 = vmul.f32 %v377_v22, %v1258_v4  ;;  %v395_v30 = vstv %s1262_s20  ;;  %v370_v32 = vrot.slane %v366_v21, 6  ;;  %v389_v33 = vstv %s1260_s14  ;;  %s1345_s26 = sld [smem:[#allocation2 + $0x102]]  ;;  %s1355_s16 = sld [smem:[#allocation2 + $0x103]] }
  0x68   : > { %v326_v31 = vadd.f32 %v322_v20, %v314_v23  ;;  %v407_v34 = vstv %s1265_s22  ;;  %v411_v35 = vstv %s1267_s24  ;;  %v415_v36 = vstv %s1270_s29  ;;  %s1357_s19 = sld [smem:[#allocation2 + $0x104]]  ;;  %s1367_s4 = sld [smem:[#allocation2 + $0x105]] }
  0x69   : > { %1638 = sst [smem:[#allocation19_spill]] %s1308_s23  ;;  %v427_v37 = vstv %s1272_s30  ;;  %v439_v38 = vstv %s1280_s5  ;;  %v396_v40 = vmul.f32 %v395_v30, %v1316_v26  ;;  %v412_v41 = vmul.f32 %v411_v35, %v1258_v4  ;;  %s1369_s3 = sld [smem:[#allocation2 + $0x106]] }
  0x6a   : > { %1639 = sst [smem:[#allocation20_spill]] %s1310_s0  ;;  %v338_v39 = vadd.f32 %v334_v24, %v326_v31  ;;  %v416_v42 = vmul.f32 %v415_v36, %v1258_v4  ;;  %v428_v43 = vmul.f32 %v427_v37, %v1258_v4  ;;  %v440_v44 = vmul.f32 %v439_v38, %v1258_v4  ;;  %s1381_s17 = sld [smem:[#allocation2 + $0x107]] }
  0x6b   : > { %1640 = sst [smem:[#allocation21_spill]] %s1322_s1  ;;  %v451_v45 = vstv %s1290_s6  ;;  %v463_v46 = vstv %s1292_s8  ;;  %v382_v51 = vrot.slane %v378_v29, 7  ;;  %v475_v53 = vstv %s1308_s23  ;;  %s1387_s25 = sld [smem:[#allocation4 + $0x1]] }
  0x6c   : > { %v350_v47 = vadd.f32 %v346_v27, %v338_v39  ;;  %v420_v48 = vrot.slane %v416_v42, 1  ;;  %v452_v49 = vmul.f32 %v451_v45, %v1258_v4  ;;  %v464_v50 = vmul.f32 %v463_v46, %v1258_v4  ;;  %s1641_s23 = sand.u32 1, %s1097_s15   ;;  %s1428_s15 = sld [smem:[#allocation4 + $0x2]] }
  0x6d   : > { %v432_v52 = vrot.slane %v428_v43, 2  ;;  %v487_v54 = vstv %s1310_s0  ;;  %v390_v56 = vmul.f32 %v389_v33, %v1316_v26  ;;  %v444_v58 = vrot.slane %v440_v44, 3  ;;  %s1393_s0 = sld [smem:[#allocation2 + $0x109]]  ;;  %s1403_s14 = sshll.u32 %s1641_s23, 3 }
  0x6e   : > { %v362_v55 = vadd.f32 %v358_v28, %v350_v47  ;;  %v424_v57 = vadd.f32 %v420_v48, %v412_v41  ;;  %v400_v59 = vrot.slane %v396_v40, 1  ;;  %v476_v60 = vmul.f32 %v475_v53, %v1258_v4  ;;  %s1441_s23 = scalar_lea.vmem [#allocation7], %s1403_s14 }
  0x6f   : > { %v488_v61 = vmul.f32 %v487_v54, %v1258_v4  ;;  %v505_v62 = vstv %s1322_s1  ;;  %v456_v1 = vrot.slane %v452_v49, 4  ;;  %v468_v2 = vrot.slane %v464_v50, 5  ;;  %s1399_s1 = sld [smem:[#allocation2 + $0x108]] }
  0x70   : > { %v374_v63 = vadd.f32 %v370_v32, %v362_v55  ;;  %v436_v0 = vadd.f32 %v432_v52, %v424_v57  ;;  %v480_v3 = vrot.slane %v476_v60, 6  ;;  %v499_v6 = vstv %s1330_s2 }
  0x71   : > { %v506_v7 = vmul.f32 %v505_v62, %v1316_v26  ;;  %v521_v8 = vstv %s1332_s21  ;;  %v492_v16 = vrot.slane %v488_v61, 7  ;;  %v525_v18 = vstv %s1343_s18 }
  0x72   : > { %v386_v11 = vadd.f32 %v382_v51, %v374_v63  ;;  %v448_v12 = vadd.f32 %v444_v58, %v436_v0  ;;  %v522_v17 = vmul.f32 %v521_v8, %v1258_v4  ;;  %v537_v20 = vstv %s1345_s26 }
  0x73   : > { %v549_v21 = vstv %s1355_s16  ;;  %v561_v23 = vstv %s1357_s19  ;;  %v526_v28 = vmul.f32 %v525_v18, %v1258_v4  ;;  %v538_v29 = vmul.f32 %v537_v20, %v1258_v4 }
  0x74   : > { %v392_v24 = vadd.f32 %v390_v56, %v386_v11  ;;  %v460_v27 = vadd.f32 %v456_v1, %v448_v12  ;;  %v550_v31 = vmul.f32 %v549_v21, %v1258_v4  ;;  %v562_v32 = vmul.f32 %v561_v23, %v1258_v4 }
  0x75   : > { %v573_v39 = vstv %s1367_s4  ;;  %v585_v40 = vstv %s1369_s3  ;;  %v530_v43 = vrot.slane %v526_v28, 1  ;;  %v542_v44 = vrot.slane %v538_v29, 2 }
  0x76   : > { %v404_v41 = vadd.f32 %v400_v59, %v392_v24  ;;  %v472_v42 = vadd.f32 %v468_v2, %v460_v27  ;;  %v500_v47 = vmul.f32 %v499_v6, %v1316_v26  ;;  %v554_v48 = vrot.slane %v550_v31, 3 }
  0x77   : > { %v574_v49 = vmul.f32 %v573_v39, %v1258_v4  ;;  %v586_v50 = vmul.f32 %v585_v40, %v1258_v4  ;;  %v534_v55 = vadd.f32 %v530_v43, %v522_v17  ;;  %v597_v56 = vstv %s1381_s17  ;;  %v1477_v43 = vld [vmem:[%s1239_s7 + $0x18] sm:$0x3] }
  0x78   : > { %v1432_v51 = vadd.f32 %v407_v34, %v404_v41  ;;  %v484_v52 = vadd.f32 %v480_v3, %v472_v42  ;;  %v510_v57 = vrot.slane %v506_v7, 1  ;;  %v517_v58 = vstv %s1387_s25 }
  0x79   : > { %v566_v59 = vrot.slane %v562_v32, 4  ;;  %v303_v60 = vmul.f32 %v301_v5, %v1295_v15  ;;  %v546_v63 = vadd.f32 %v542_v44, %v534_v55  ;;  %v578_v0 = vrot.slane %v574_v49, 5 }
  0x7a   : > { %v496_v61 = vadd.f32 %v492_v16, %v484_v52  ;;  %v615_v1 = vstv %s1393_s0  ;;  %660 = vst [vmem:[%s1441_s23] sm:$0x1] %v1432_v51  ;;  %v590_v2 = vrot.slane %v586_v50, 6  ;;  %v598_v3 = vmul.f32 %v597_v56, %v1258_v4  ;;  %s292_s0 = scalar_lea.vmem [#allocation8], %s1403_s14 }
  0x7b   : > { %v609_v7 = vstv %s1399_s1  ;;  %v311_v5 = vrot.slane %v1313_v25, 1  ;;  %v558_v12 = vadd.f32 %v554_v48, %v546_v63  ;;  %v319_v16 = vmul.f32 %v317_v9, %v1295_v15  ;;  %s1646_s1 = sld [smem:[#allocation16_spill]] }
  0x7c   : > { %v502_v11 = vadd.f32 %v500_v47, %v496_v61  ;;  %v331_v17 = vmul.f32 %v329_v10, %v1295_v15  ;;  %v616_v24 = vmul.f32 %v615_v1, %v1316_v26  ;;  %v343_v27 = vmul.f32 %v341_v13, %v1295_v15 }
  0x7d   : > { %v315_v4 = vadd.f32 %v311_v5, %v303_v60  ;;  %v355_v25 = vmul.f32 %v353_v14, %v1295_v15  ;;  %v570_v29 = vadd.f32 %v566_v59, %v558_v12  ;;  %v323_v31 = vrot.slane %v319_v16, 2 }
  0x7e   : > { %v514_v28 = vadd.f32 %v510_v57, %v502_v11  ;;  %v335_v9 = vrot.slane %v331_v17, 3  ;;  %v602_v32 = vrot.slane %v598_v3, 7  ;;  %v610_v10 = vmul.f32 %v609_v7, %v1316_v26 }
  0x7f   : > { %v627_v41 = vstv %s1428_s15  ;;  %v367_v13 = vmul.f32 %v365_v19, %v1295_v15  ;;  %v582_v42 = vadd.f32 %v578_v0, %v570_v29  ;;  %v327_v44 = vadd.f32 %v323_v31, %v315_v4 }
  0x80   : > { %v1474_v14 = vadd.f32 %v517_v58, %v514_v28  ;;  %v347_v47 = vrot.slane %v343_v27, 4  ;;  %v620_v48 = vrot.slane %v616_v24, 1  ;;  %v359_v26 = vrot.slane %v355_v25, 5 }
  0x81   : > { %v371_v49 = vrot.slane %v367_v13, 6  ;;  %v379_v50 = vmul.f32 %v377_v22, %v1295_v15  ;;  %v594_v19 = vadd.f32 %v590_v2, %v582_v42  ;;  %v339_v52 = vadd.f32 %v335_v9, %v327_v44  ;;  %p1647_p9 = scmp.ne.s32.totalorder %s1646_s1, 0 }
  0x82   : > { %666 = vst [vmem:[%s1441_s23 + $0x1] sm:$0x1] %v1474_v14  ;;  %v413_v55 = vmul.f32 %v411_v35, %v1295_v15  ;;  %v417_v57 = vmul.f32 %v415_v36, %v1295_v15  ;;  %v397_v59 = vmul.f32 %v395_v30, %v1477_v43  ;;  %v429_v60 = vmul.f32 %v427_v37, %v1295_v15  ;;  %s1648_s2 = sld [smem:[#allocation12_spill]] (%p1647_p9)  ;;  %s1649_s17 = sld [smem:[#allocation25_spill]] (%p1647_p9) }
  0x83   : > { %v441_v22 = vmul.f32 %v439_v38, %v1295_v15  ;;  %v453_v61 = vmul.f32 %v451_v45, %v1295_v15  ;;  %v606_v63 = vadd.f32 %v602_v32, %v594_v19  ;;  %v351_v0 = vadd.f32 %v347_v47, %v339_v52 }
  0x84   : > { %v421_v2 = vrot.slane %v417_v57, 1  ;;  %v465_v35 = vmul.f32 %v463_v46, %v1295_v15  ;;  %v383_v3 = vrot.slane %v379_v50, 7  ;;  %v391_v30 = vmul.f32 %v389_v33, %v1477_v43 }
  0x85   : > { %v433_v36 = vrot.slane %v429_v60, 2  ;;  %v477_v37 = vmul.f32 %v475_v53, %v1295_v15  ;;  %v612_v38 = vadd.f32 %v610_v10, %v606_v63  ;;  %v363_v45 = vadd.f32 %v359_v26, %v351_v0 }
  0x86   : > { %v425_v5 = vadd.f32 %v421_v2, %v413_v55  ;;  %v445_v11 = vrot.slane %v441_v22, 3  ;;  %v630_v46 = vmax.f32 %v1432_v51, %v1474_v14  ;;  %v401_v12 = vrot.slane %v397_v59, 1 }
  0x87   : > { %v457_v16 = vrot.slane %v453_v61, 4  ;;  %v469_v33 = vrot.slane %v465_v35, 5  ;;  %v624_v17 = vadd.f32 %v620_v48, %v612_v38  ;;  %v375_v24 = vadd.f32 %v371_v49, %v363_v45 }
  0x88   : > { %v437_v4 = vadd.f32 %v433_v36, %v425_v5  ;;  %v481_v53 = vrot.slane %v477_v37, 6  ;;  %v489_v27 = vmul.f32 %v487_v54, %v1295_v15  ;;  %v523_v25 = vmul.f32 %v521_v8, %v1295_v15  ;;  %s956_s3 = sshll.u32 (%p1647_p9), %s1648_s2, 2 }
  0x89   : > { %v527_v28 = vmul.f32 %v525_v18, %v1295_v15  ;;  %v539_v29 = vmul.f32 %v537_v20, %v1295_v15  ;;  %v628_v31 = vadd.f32 %v627_v41, %v624_v17  ;;  %v387_v9 = vadd.f32 %v383_v3, %v375_v24  ;;  %s693_s18 = scalar_lea.vmem (%p1647_p9), %s1649_s17, %s956_s3 }
  0x8a   : > { %v449_v32 = vadd.f32 %v445_v11, %v437_v4  ;;  %v551_v10 = vmul.f32 %v549_v21, %v1295_v15  ;;  %v501_v54 = vmul.f32 %v499_v6, %v1477_v43  ;;  %v563_v8 = vmul.f32 %v561_v23, %v1295_v15 }
  0x8b   : > { %v531_v13 = vrot.slane %v527_v28, 1  ;;  %v543_v42 = vrot.slane %v539_v29, 2  ;;  %v632_v18 = vmax.f32 %v630_v46, %v628_v31  ;;  %672 = vst [vmem:[%s1441_s23 + $0x2] sm:$0x1] %v628_v31  ;;  %v393_v20 = vadd.f32 %v391_v30, %v387_v9 }
  0x8c   : > { %v461_v44 = vadd.f32 %v457_v16, %v449_v32  ;;  %v507_v47 = vmul.f32 %v505_v62, %v1477_v43  ;;  %v493_v48 = vrot.slane %v489_v27, 7  ;;  %v555_v21 = vrot.slane %v551_v10, 3 }
  0x8d   : > { %v535_v26 = vadd.f32 %v531_v13, %v523_v25  ;;  %v575_v6 = vmul.f32 %v573_v39, %v1295_v15  ;;  %v634_v49 = vsub.f32 %v1432_v51, %v632_v18  ;;  %v640_v23 = vsub.f32 %v1474_v14, %v632_v18 }
  0x8e   : > { %v646_v50 = vsub.f32 %v628_v31, %v632_v18  ;;  %v405_v19 = vadd.f32 %v401_v12, %v393_v20  ;;  %v473_v52 = vadd.f32 %v469_v33, %v461_v44  ;;  %v567_v57 = vrot.slane %v563_v8, 4 }
  0x8f   : > { %v547_v55 = vadd.f32 %v543_v42, %v535_v26  ;;  %v587_v62 = vmul.f32 %v585_v40, %v1295_v15  ;;  %v636_v59 = vmul.f32 1.442695, %v634_v49  ;;  %v642_v60 = vmul.f32 1.442695, %v640_v23 }
  0x90   : > { %v648_v22 = vmul.f32 1.442695, %v646_v50  ;;  %v409_v61 = vadd.f32 %v407_v34, %v405_v19  ;;  %v485_v39 = vadd.f32 %v481_v53, %v473_v52  ;;  %v579_v51 = vrot.slane %v575_v6, 5 }
  0x91   : > { %v559_v63 = vadd.f32 %v555_v21, %v547_v55  ;;  %v599_v14 = vmul.f32 %v597_v56, %v1295_v15  ;;  %1021 = vpow2.f32 %v636_v59  ;;  %v511_v0 = vrot.slane %v507_v47, 1 }
  0x92   : > { %661 = vst [vmem:[%s1441_s23 + $0x4] sm:$0x1] %v409_v61  ;;  %1023 = vpow2.f32 %v642_v60  ;;  %v497_v40 = vadd.f32 %v493_v48, %v485_v39  ;;  %v591_v35 = vrot.slane %v587_v62, 6  ;;  %v617_v36 = vmul.f32 %v615_v1, %v1477_v43  ;;  %v709_v47 = vld [vmem:[%s1441_s23] sm:$0xf] (%p1647_p9) }
  0x93   : > { %v571_v2 = vadd.f32 %v567_v57, %v559_v63  ;;  %1025 = vpow2.f32 %v648_v22  ;;  %v603_v30 = vrot.slane %v599_v14, 7  ;;  %v611_v15 = vmul.f32 %v609_v7, %v1477_v43  ;;  %710 = vst [vmem:[%s693_s18] sm:$0xf] (%p1647_p9), %v709_v47 }
  0x94   : > { %v503_v3 = vadd.f32 %v501_v54, %v497_v40  ;;  %v621_v5 = vrot.slane %v617_v36, 1 }
  0x95   : > { %v583_v34 = vadd.f32 %v579_v51, %v571_v2 }
  0x96   : > { %v515_v37 = vadd.f32 %v511_v0, %v503_v3 }
  0x97   : > { %v595_v38 = vadd.f32 %v591_v35, %v583_v34 }
  0x98   : > { %v519_v56 = vadd.f32 %v517_v58, %v515_v37 }
  0x99   : > { %v607_v45 = vadd.f32 %v603_v30, %v595_v38 }
  0x9a   : > { %667 = vst [vmem:[%s1441_s23 + $0x5] sm:$0x1] %v519_v56  ;;  %v631_v33 = vmax.f32 %v409_v61, %v519_v56 }
  0x9b   : > { %v613_v11 = vadd.f32 %v611_v15, %v607_v45  ;;  %v1022_v46 = vpop.eup %1021 }
  0x9c   : > { %v1024_v12 = vpop.eup %1023 }
  0x9d   : > { %v625_v16 = vadd.f32 %v621_v5, %v613_v11  ;;  %v1026_v17 = vpop.eup %1025  ;;  %v652_v24 = vadd.f32 %v1024_v12, %v1022_v46 }
  0x9f   : > { %v629_v1 = vadd.f32 %v627_v41, %v625_v16  ;;  %v654_v4 = vadd.f32 %v1026_v17, %v652_v24 }
  0xa1   : > { %v633_v53 = vmax.f32 %v631_v33, %v629_v1  ;;  %673 = vst [vmem:[%s1441_s23 + $0x6] sm:$0x1] %v629_v1  ;;  %1027 = vrcp.f32 %v654_v4 }
  0xa3   : > { %v635_v7 = vsub.f32 %v409_v61, %v633_v53  ;;  %v641_v43 = vsub.f32 %v519_v56, %v633_v53  ;;  %v647_v58 = vsub.f32 %v629_v1, %v633_v53 }
  0xa5   : > { %v638_v27 = vmul.f32 1.442695, %v635_v7  ;;  %v644_v25 = vmul.f32 1.442695, %v641_v43  ;;  %v650_v28 = vmul.f32 1.442695, %v647_v58 }
  0xa7   : > { %1029 = vpow2.f32 %v638_v27 }
  0xa8   : > { %1031 = vpow2.f32 %v644_v25  ;;  %v711_v48 = vld [vmem:[%s1441_s23 + $0x4] sm:$0xf] (%p1647_p9) }
  0xa9   : > { %1033 = vpow2.f32 %v650_v28  ;;  %712 = vst [vmem:[%s693_s18 + $0x8] sm:$0xf] (%p1647_p9), %v711_v48 }
  0xab   : > { %v1028_v29 = vpop.eup %1027 }
  0xac   : > { %v662_v31 = vmul.f32 %v1028_v29, %v1022_v46  ;;  %v668_v9 = vmul.f32 %v1028_v29, %v1024_v12  ;;  %v674_v32 = vmul.f32 %v1028_v29, %v1026_v17 }
  0xae   : > { %664 = vst [vmem:[%s292_s0] sm:$0x1] %v662_v31  ;;  %670 = vst [vmem:[%s292_s0 + $0x1] sm:$0x1] %v668_v9 }
  0xaf   : > { %676 = vst [vmem:[%s292_s0 + $0x2] sm:$0x1] %v674_v32 }
  0xb1   : > { %v1030_v41 = vpop.eup %1029 }
  0xb2   : > { %v1032_v10 = vpop.eup %1031 }
  0xb3   : > { %v1034_v54 = vpop.eup %1033  ;;  %v653_v13 = vadd.f32 %v1032_v10, %v1030_v41 }
  0xb5   : > { %v655_v42 = vadd.f32 %v1034_v54, %v653_v13 }
  0xb7   : > { %1035 = vrcp.f32 %v655_v42 }
  0xbf   : > { %688 = sbr.rel (!%p1647_p9) target bundleno = 198 (0xc6), region = 82 }
  0xc1   : > { %v1036_v8 = vpop.eup %1035 }
  0xc2   : > { %v663_v18 = vmul.f32 %v1036_v8, %v1030_v41  ;;  %v669_v20 = vmul.f32 %v1036_v8, %v1032_v10  ;;  %v675_v44 = vmul.f32 %v1036_v8, %v1034_v54 }
  0xc4   : > { %665 = vst [vmem:[%s292_s0 + $0x4] sm:$0x1] %v663_v18  ;;  %671 = vst [vmem:[%s292_s0 + $0x5] sm:$0x1] %v669_v20 }
  0xc5   : > { %677 = vst [vmem:[%s292_s0 + $0x6] sm:$0x1] %v675_v44 }
  0xc6 PF: > { %s1650_s19 = sld [smem:[#allocation16_spill]] }
  0xcc   : > { %p1651_p10 = scmp.ne.s32.totalorder %s1650_s19, 0 }
  0xcd   : > { %s1652_s21 = sld [smem:[#allocation12_spill]] (%p1651_p10)  ;;  %v760_v26 = vld [vmem:[%s292_s0] sm:$0xf] (%p1651_p10)  ;;  %v762_v21 = vld [vmem:[%s292_s0 + $0x4] sm:$0xf] (%p1651_p10)  ;;  %s1653_s11 = sld [smem:[#allocation26_spill]] (%p1651_p10) }
  0xce   : > { %739 = sbr.rel (!%p1651_p10) target bundleno = 214 (0xd6), region = 123 }
  0xd3   : > { %s957_s25 = sshll.u32 (%p1651_p10), %s1652_s21, 2 }
  0xd4   : > { %s744_s12 = scalar_lea.vmem (%p1651_p10), %s1653_s11, %s957_s25 }
  0xd5   : > { %761 = vst [vmem:[%s744_s12] sm:$0xf] %v760_v26  ;;  %763 = vst [vmem:[%s744_s12 + $0x8] sm:$0xf] %v762_v21 }
  0xd6 PF: > { %s1654_s13 = sld [smem:[#allocation14_spill]]  ;;  %s1655_s15 = sld [smem:[#allocation11_spill]] }
  0xd7   : > { %s1656_s16 = sld [smem:[#allocation17_spill]]  ;;  %s1657_s17 = sld [smem:[#allocation13_spill]] }
  0xd8   : > { %s1658_s18 = sld [smem:[#allocation15_spill]] }
  0xdc   : > { %s17_s19 = sadd.s32 1, %s1654_s13  }
  0xdd   : > { %p14_p12 = scmp.ge.s32.totalorder %s17_s19, 4  }
  0xdf   :  { %16 = sbr.rel (!%p14_p12) target bundleno = 10 (0xa), region = 208 }
  0xe6   :  { %807 = vsyncpa [#allocation3], 1 }
  0xe7   :  { %809 = vsyncpa [#allocation3 + $0x1], 1 }
  0xe8   :  { %810 = vsyncpa [#allocation5], 1 }

</bundles_post_ra>
